<compile_context>
chip_gen: v5e
topology: v5e:2x2
jax: 0.10.0
libtpu: 0.0.40
codegen_flags: <defaults>
</compile_context>

<pallas_src>
import jax
import jax.numpy as jnp
from jax.experimental import pallas as pl
from jax.experimental.pallas import tpu as pltpu


# ------------------------------- Pallas kernel --------------------------------
def _attention_kernel(x_ref, q_ref, k_ref, v_ref, pc_ref, out_ref):
    """One (batch, query-tile) grid step.

    x_ref : (1, C,   TQ)  f32  -- residual + channel-attention value columns
    q_ref : (1, C8p, TQ)  bf16 -- query tile (channel dim zero-padded to mult of 8)
    k_ref : (1, C8p, HW)  bf16 -- all keys
    v_ref : (1, C,   HW)  bf16 -- spatial value, gamma_s pre-folded
    pc_ref: (1, C,   C)   bf16 -- channel attention matrix, gamma_c pre-folded
    out   : (1, C,   TQ)  f32
    """
    x_tile = x_ref[0]                                        # (C, TQ) f32
    x_bf = x_tile.astype(jnp.bfloat16)

    # Spatial affinity for this query tile: s[j, i] = sum_o k[o, j] * q[o, i].
    s = jax.lax.dot_general(
        k_ref[0], q_ref[0],
        dimension_numbers=(((0,), (0,)), ((), ())),
        preferred_element_type=jnp.float32)                  # (HW, TQ) f32

    # Softmax over keys (axis 0); normalization deferred to one per-column scale.
    m = jnp.max(s, axis=0, keepdims=True)                    # (1, TQ)
    p = jnp.exp(s - m)                                       # f32 (v5e-safe)
    l = jnp.sum(p, axis=0, keepdims=True)                    # (1, TQ)

    ws = jax.lax.dot_general(                                # (C, TQ) unnormalized,
        v_ref[0], p.astype(jnp.bfloat16),                    # gamma_s already in v
        dimension_numbers=(((1,), (0,)), ((), ())),
        preferred_element_type=jnp.float32)
    wc = jax.lax.dot_general(                                # (C, TQ), gamma_c and
        pc_ref[0], x_bf,                                     # 1/den already in pc
        dimension_numbers=(((1,), (0,)), ((), ())),
        preferred_element_type=jnp.float32)

    inv_l = 1.0 / l                                          # (1, TQ)
    out_ref[0] = (ws * inv_l + wc + 2.0 * x_tile).astype(out_ref.dtype)


# ------------------------------- host wrapper ----------------------------------
def _conv2d_nchw(x, w, b, padding):
    out = jax.lax.conv_general_dilated(
        x, w, window_strides=(1, 1), padding=padding,
        dimension_numbers=("NCHW", "OIHW", "NCHW"))
    return out + b.reshape(1, -1, 1, 1)


def _vmem_limit_bytes():
    # Generation-aware VMEM budget: ~3/4 of physical, capped.  v7x (64 MiB physical)
    # -> 48 MiB; v5e/v6e (128 MiB) -> 96 MiB.  Falls back safely if the query fails.
    try:
        cap = int(pltpu.get_tpu_info().vmem_capacity_bytes)
    except Exception:
        cap = 64 * 1024 * 1024
    return min((cap * 3) // 4, 112 * 1024 * 1024)


def attention_forward(x_nchw, params, *, tq=256):
    """x_nchw: (B, C, H, W) float32.  Returns (B, C, H, W) float32."""
    assert tq % 128 == 0
    B, C, H, W = x_nchw.shape
    HW = H * W
    C8 = C // 8

    x = x_nchw.astype(jnp.float32)
    x2d = x.reshape(B, C, HW)
    gs = params["gamma_s"].astype(jnp.float32).reshape(())
    gc = params["gamma_c"].astype(jnp.float32).reshape(())

    # ---- per-batch precompute in XLA (tiny convs + (C,C) channel softmax) --------
    q = _conv2d_nchw(x, params["Wq"], params["bq"], ((0, 0), (1, 1))).reshape(B, C8, HW)
    k = _conv2d_nchw(x, params["Wk"], params["bk"], ((1, 1), (0, 0))).reshape(B, C8, HW)
    v = _conv2d_nchw(x, params["Wv"], params["bv"], ((0, 0), (0, 0))).reshape(B, C, HW)

    ca = jnp.einsum("bci,bdi->bcd", x2d, x2d)                # (B, C, C) f32
    ca = jnp.max(ca, axis=-1, keepdims=True) - ca
    pc = (gc * jax.nn.softmax(ca, axis=-1)).astype(jnp.bfloat16)

    q = q.astype(jnp.bfloat16)
    k = k.astype(jnp.bfloat16)
    v = (gs * v).astype(jnp.bfloat16)                        # fold gamma_s into v

    # Pad the tiny q/k channel dim to a multiple of 8 sublanes (zeros add nothing
    # to the contraction) for a clean MXU operand layout.
    C8p = ((C8 + 7) // 8) * 8
    if C8p != C8:
        cpad = ((0, 0), (0, C8p - C8), (0, 0))
        q = jnp.pad(q, cpad)
        k = jnp.pad(k, cpad)

    # ---- query tiling: pad only the query side, keys stay un-padded --------------
    if HW <= tq:
        TQ, HW_pad = HW, HW
    else:
        TQ = tq
        HW_pad = ((HW + TQ - 1) // TQ) * TQ
    NQ = HW_pad // TQ
    if HW_pad != HW:
        qpad = ((0, 0), (0, 0), (0, HW_pad - HW))
        x_in = jnp.pad(x2d, qpad)
        q_in = jnp.pad(q, qpad)
    else:
        x_in, q_in = x2d, q

    grid_spec = pltpu.PrefetchScalarGridSpec(
        num_scalar_prefetch=0,
        grid=(B, NQ),
        in_specs=[
            pl.BlockSpec((1, C, TQ), lambda b, t: (b, 0, t)),      # x (residual / CAB value)
            pl.BlockSpec((1, C8p, TQ), lambda b, t: (b, 0, t)),    # q tile
            pl.BlockSpec((1, C8p, HW), lambda b, t: (b, 0, 0)),    # k (all keys, per batch)
            pl.BlockSpec((1, C, HW), lambda b, t: (b, 0, 0)),      # v (all keys, per batch)
            pl.BlockSpec((1, C, C), lambda b, t: (b, 0, 0)),       # channel attention
        ],
        out_specs=pl.BlockSpec((1, C, TQ), lambda b, t: (b, 0, t)),
    )

    out = pl.pallas_call(
        _attention_kernel,
        out_shape=jax.ShapeDtypeStruct((B, C, HW_pad), jnp.float32),
        grid_spec=grid_spec,
        compiler_params=pltpu.CompilerParams(
            dimension_semantics=("parallel", "parallel"),
            vmem_limit_bytes=_vmem_limit_bytes()),
    )(x_in, q_in, k, v, pc)

    return out[:, :, :HW].reshape(B, C, H, W)


# ---------------------------- pure-JAX reference -------------------------------
def attention_reference(x, params):
    B, C, H, W = x.shape
    gs = params["gamma_s"][0]
    gc = params["gamma_c"][0]

    # SpatialAttentionBlock
    q = _conv2d_nchw(x, params["Wq"], params["bq"], ((0, 0), (1, 1)))
    k = _conv2d_nchw(x, params["Wk"], params["bk"], ((1, 1), (0, 0)))
    v = _conv2d_nchw(x, params["Wv"], params["bv"], ((0, 0), (0, 0)))
    pq = q.reshape(B, -1, H * W).transpose(0, 2, 1)
    pk = k.reshape(B, -1, H * W)
    aff = jax.nn.softmax(jnp.matmul(pq, pk), axis=-1)
    pv = v.reshape(B, C, H * W)
    ws = jnp.matmul(pv, aff.transpose(0, 2, 1)).reshape(B, C, H, W)
    sab = gs * ws + x

    # ChannelAttentionBlock
    pq2 = x.reshape(B, C, -1)
    a2 = jnp.matmul(pq2, pq2.transpose(0, 2, 1))
    a2 = jnp.max(a2, axis=-1, keepdims=True) - a2
    a2 = jax.nn.softmax(a2, axis=-1)
    wc = jnp.matmul(a2, pq2).reshape(B, C, H, W)
    cab = gc * wc + x
    return sab + cab


if __name__ == "__main__":
    B, C, H, W = 2, 16, 16, 16
    C8 = C // 8

    key = jax.random.PRNGKey(0)
    ks = jax.random.split(key, 8)
    params = {
        "Wq": jax.random.normal(ks[0], (C8, C, 1, 3), jnp.float32) * 0.1,
        "bq": jax.random.normal(ks[1], (C8,), jnp.float32) * 0.1,
        "Wk": jax.random.normal(ks[2], (C8, C, 3, 1), jnp.float32) * 0.1,
        "bk": jax.random.normal(ks[3], (C8,), jnp.float32) * 0.1,
        "Wv": jax.random.normal(ks[4], (C, C, 1, 1), jnp.float32) * 0.1,
        "bv": jax.random.normal(ks[5], (C,), jnp.float32) * 0.1,
        # nn.Parameter(torch.zeros(1)) in the original; nonzero here so the
        # attention paths actually contribute to the output.
        "gamma_s": jnp.array([0.7], jnp.float32),
        "gamma_c": jnp.array([0.3], jnp.float32),
    }
    x = jax.random.normal(ks[6], (B, C, H, W), jnp.float32)

    out = attention_forward(x, params)
    out = jax.block_until_ready(out)

    ref = attention_reference(x, params)
    assert out.shape == (B, C, H, W)
    assert jnp.allclose(out, ref, atol=2e-2, rtol=2e-2), (
        float(jnp.max(jnp.abs(out - ref))))

    print("KERNEL_OK")
</pallas_src>

<mosaic_0001>
module attributes {stable_mosaic.version = 11 : i64} {
  func.func @_attention_kernel(%arg0: i32, %arg1: i32, %arg2: memref<1x16x256xf32, #tpu.memory_space<vmem>>, %arg3: memref<1x8x256xbf16, #tpu.memory_space<vmem>>, %arg4: memref<1x8x256xbf16, #tpu.memory_space<vmem>>, %arg5: memref<1x16x256xbf16, #tpu.memory_space<vmem>>, %arg6: memref<1x16x16xbf16, #tpu.memory_space<vmem>>, %arg7: memref<1x16x256xf32, #tpu.memory_space<vmem>>) attributes {dimension_semantics = [#tpu.dimension_semantics<parallel>, #tpu.dimension_semantics<parallel>], iteration_bounds = array<i64: 2, 1>, scalar_prefetch = 0 : i64, scratch_operands = 0 : i64, tpu.core_type = #tpu.core_type<tc>, window_params = [{transform_indices = @transform_0, window_bounds = array<i64: 1, 16, 256>}, {transform_indices = @transform_1, window_bounds = array<i64: 1, 8, 256>}, {transform_indices = @transform_2, window_bounds = array<i64: 1, 8, 256>}, {transform_indices = @transform_3, window_bounds = array<i64: 1, 16, 256>}, {transform_indices = @transform_4, window_bounds = array<i64: 1, 16, 16>}, {transform_indices = @transform_5, window_bounds = array<i64: 1, 16, 256>}]} {
    %c0 = arith.constant 0 : index
    %c0_0 = arith.constant 0 : index
    %c0_1 = arith.constant 0 : index
    %0 = vector.load %arg2[%c0, %c0_0, %c0_1] : memref<1x16x256xf32, #tpu.memory_space<vmem>>, vector<1x16x256xf32>
    %1 = vector.shape_cast %0 : vector<1x16x256xf32> to vector<16x256xf32>
    %2 = arith.truncf %1 : vector<16x256xf32> to vector<16x256xbf16>
    %c0_2 = arith.constant 0 : index
    %c0_3 = arith.constant 0 : index
    %c0_4 = arith.constant 0 : index
    %3 = vector.load %arg4[%c0_2, %c0_3, %c0_4] : memref<1x8x256xbf16, #tpu.memory_space<vmem>>, vector<1x8x256xbf16>
    %4 = vector.shape_cast %3 : vector<1x8x256xbf16> to vector<8x256xbf16>
    %c0_5 = arith.constant 0 : index
    %c0_6 = arith.constant 0 : index
    %c0_7 = arith.constant 0 : index
    %5 = vector.load %arg3[%c0_5, %c0_6, %c0_7] : memref<1x8x256xbf16, #tpu.memory_space<vmem>>, vector<1x8x256xbf16>
    %6 = vector.shape_cast %5 : vector<1x8x256xbf16> to vector<8x256xbf16>
    %cst = arith.constant dense<0.000000e+00> : vector<256x256xf32>
    %7 = tpu.matmul %4, %6, %cst {dimension_numbers = #tpu.dot_dimension_numbers<[0], [0], [1], [1], [0, 1, 1, 1], [], []>} : vector<8x256xbf16>, vector<8x256xbf16>, vector<256x256xf32> -> vector<256x256xf32>
    %cst_8 = arith.constant dense<0xFF800000> : vector<256xf32>
    %8 = vector.multi_reduction <maximumf>, %7, %cst_8 [0] : vector<256x256xf32> to vector<256xf32>
    %9 = vector.shape_cast %8 : vector<256xf32> to vector<1x256xf32>
    %10 = vector.broadcast %9 : vector<1x256xf32> to vector<256x256xf32>
    %11 = arith.subf %7, %10 : vector<256x256xf32>
    %12 = math.exp %11 : vector<256x256xf32>
    %cst_9 = arith.constant dense<0.000000e+00> : vector<256xf32>
    %13 = vector.multi_reduction <add>, %12, %cst_9 [0] : vector<256x256xf32> to vector<256xf32>
    %14 = vector.shape_cast %13 : vector<256xf32> to vector<1x256xf32>
    %c0_10 = arith.constant 0 : index
    %c0_11 = arith.constant 0 : index
    %c0_12 = arith.constant 0 : index
    %15 = vector.load %arg5[%c0_10, %c0_11, %c0_12] : memref<1x16x256xbf16, #tpu.memory_space<vmem>>, vector<1x16x256xbf16>
    %16 = vector.shape_cast %15 : vector<1x16x256xbf16> to vector<16x256xbf16>
    %17 = arith.truncf %12 : vector<256x256xf32> to vector<256x256xbf16>
    %cst_13 = arith.constant dense<0.000000e+00> : vector<16x256xf32>
    %18 = tpu.matmul %16, %17, %cst_13 {dimension_numbers = #tpu.dot_dimension_numbers<[1], [0], [0], [1], [0, 0, 1, 1], [], []>} : vector<16x256xbf16>, vector<256x256xbf16>, vector<16x256xf32> -> vector<16x256xf32>
    %c0_14 = arith.constant 0 : index
    %c0_15 = arith.constant 0 : index
    %c0_16 = arith.constant 0 : index
    %19 = vector.load %arg6[%c0_14, %c0_15, %c0_16] : memref<1x16x16xbf16, #tpu.memory_space<vmem>>, vector<1x16x16xbf16>
    %20 = vector.shape_cast %19 : vector<1x16x16xbf16> to vector<16x16xbf16>
    %cst_17 = arith.constant dense<0.000000e+00> : vector<16x256xf32>
    %21 = tpu.matmul %20, %2, %cst_17 {dimension_numbers = #tpu.dot_dimension_numbers<[1], [0], [0], [1], [0, 0, 1, 1], [], []>} : vector<16x16xbf16>, vector<16x256xbf16>, vector<16x256xf32> -> vector<16x256xf32>
    %cst_18 = arith.constant 1.000000e+00 : f32
    %22 = vector.broadcast %cst_18 : f32 to vector<1x256xf32>
    %23 = arith.divf %22, %14 : vector<1x256xf32>
    %24 = vector.broadcast %23 : vector<1x256xf32> to vector<16x256xf32>
    %25 = arith.mulf %18, %24 : vector<16x256xf32>
    %26 = arith.addf %25, %21 : vector<16x256xf32>
    %cst_19 = arith.constant 2.000000e+00 : f32
    %27 = vector.broadcast %cst_19 : f32 to vector<16x256xf32>
    %28 = arith.mulf %27, %1 : vector<16x256xf32>
    %29 = arith.addf %26, %28 : vector<16x256xf32>
    %c0_20 = arith.constant 0 : index
    %c0_21 = arith.constant 0 : index
    %c0_22 = arith.constant 0 : index
    %30 = vector.load %arg7[%c0_20, %c0_21, %c0_22] : memref<1x16x256xf32, #tpu.memory_space<vmem>>, vector<1x16x256xf32>
    %31 = vector.shape_cast %30 : vector<1x16x256xf32> to vector<16x256xf32>
    %32 = vector.shape_cast %29 : vector<16x256xf32> to vector<1x16x256xf32>
    tpu.vector_store %arg7[%c0_20, %c0_21, %c0_22], %32 {strides = array<i32>} : memref<1x16x256xf32, #tpu.memory_space<vmem>>, vector<1x16x256xf32>,
    return
  }
  func.func @transform_0(%arg0: i32, %arg1: i32) -> (i32, i32, i32) {
    %c0_i32 = arith.constant 0 : i32
    %c0_i32_0 = arith.constant 0 : i32
    return %arg0, %c0_i32, %arg1 : i32, i32, i32
  }
  func.func @transform_1(%arg0: i32, %arg1: i32) -> (i32, i32, i32) {
    %c0_i32 = arith.constant 0 : i32
    %c0_i32_0 = arith.constant 0 : i32
    return %arg0, %c0_i32, %arg1 : i32, i32, i32
  }
  func.func @transform_2(%arg0: i32, %arg1: i32) -> (i32, i32, i32) {
    %c0_i32 = arith.constant 0 : i32
    %c0_i32_0 = arith.constant 0 : i32
    %c0_i32_1 = arith.constant 0 : i32
    return %arg0, %c0_i32, %c0_i32_0 : i32, i32, i32
  }
  func.func @transform_3(%arg0: i32, %arg1: i32) -> (i32, i32, i32) {
    %c0_i32 = arith.constant 0 : i32
    %c0_i32_0 = arith.constant 0 : i32
    %c0_i32_1 = arith.constant 0 : i32
    return %arg0, %c0_i32, %c0_i32_0 : i32, i32, i32
  }
  func.func @transform_4(%arg0: i32, %arg1: i32) -> (i32, i32, i32) {
    %c0_i32 = arith.constant 0 : i32
    %c0_i32_0 = arith.constant 0 : i32
    %c0_i32_1 = arith.constant 0 : i32
    return %arg0, %c0_i32, %c0_i32_0 : i32, i32, i32
  }
  func.func @transform_5(%arg0: i32, %arg1: i32) -> (i32, i32, i32) {
    %c0_i32 = arith.constant 0 : i32
    %c0_i32_0 = arith.constant 0 : i32
    return %arg0, %c0_i32, %arg1 : i32, i32, i32
  }
}

</mosaic_0001>

<bundles_post_ra>
// kernel: tpu_custom_call.1
= control target key start
LH: loop header
LB: loop body
LE: loop exit
PB: predicated region body
PF: predicated region fallthrough
CT: control target
= control target key end

     0   :  { %s2831_s0 = inlined_call_operand.hbm [shape: f32[2,16,256], index: 0, kind: input, shape index: {}]   ;;  %s2832_s1 = inlined_call_operand.hbm [shape: bf16[2,8,256], index: 1, kind: input, shape index: {}]   ;;  %s2833_s2 = inlined_call_operand.hbm [shape: bf16[2,8,256], index: 2, kind: input, shape index: {}]   ;;  %s2834_s3 = inlined_call_operand.hbm [shape: bf16[2,16,256], index: 3, kind: input, shape index: {}]   ;;  %s2835_s4 = inlined_call_operand.hbm [shape: bf16[2,16,16], index: 4, kind: input, shape index: {}]   ;;  %s2836_s5 = inlined_call_operand.hbm [shape: f32[2,16,256], index: 5, kind: output, shape index: {}]  }
   0x1   :  { %2873 = sst [smem:[#allocation43_spill]] %s2832_s1 }
   0x2   :  { %2874 = sst [smem:[#allocation44_spill]] %s2834_s3 }
   0x3   :  { %2875 = sst [smem:[#allocation45_spill]] %s2835_s4 }
   0x4   :  { %10 = vsyncpa [#allocation3], 0 }
   0x5   :  { %12 = vsyncpa [#allocation3 + $0x1], 0 }
   0x6   :  { %13 = vsyncpa [#allocation6], 0 }
   0x7   :  { %15 = vsyncpa [#allocation6 + $0x1], 0 }
   0x8   :  { %16 = vsyncpa [#allocation9], 0 }
   0x9   :  { %18 = vsyncpa [#allocation9 + $0x1], 0 }
   0xa   :  { %19 = vsyncpa [#allocation4], 0 }
   0xb   :  { %21 = vsyncpa [#allocation4 + $0x1], 0  ;;  %s2021_s18 = smov 0   ;;  %s2023_s19 = smov 0  }
   0xc   :  { %s2025_s20 = smov 0   ;;  %s2027_s21 = smov 0  }
   0xd   :  { %s2029_s22 = smov 0   ;;  %s2031_s23 = smov 0  }
   0xe LB: > { %2876 = sst [smem:[#allocation16_spill]] %s1961_s18  ;;  %s2052_s24 = sadd.s32 4294967295, %s1981_s23   ;;  %s1981_s23 = sphi %s2031_s23, %s27_s23   ;;  %s1977_s22 = sphi %s2029_s22, %s2962_s22   ;;  %s1973_s21 = sphi %s2027_s21, %s2961_s21   ;;  %s1969_s20 = sphi %s2025_s20, %s2957_s20   ;;  %s1965_s19 = sphi %s2023_s19, %s2960_s19   ;;  %s1961_s18 = sphi %s2021_s18, %s2959_s18  }
   0xf   : > { %2877 = sst [smem:[#allocation17_spill]] %s1969_s20  ;;  %s1431_s25 = sadd.s32 4294967294, %s1981_s23  }
  0x10   : > { %2878 = sst [smem:[#allocation18_spill]] %s1981_s23  ;;  %s39_s26 = sadd.s32 1, %s1977_s22 }
  0x11   : > { %s48_s27 = sadd.s32 1, %s1969_s20  ;;  %p41_p0 = scmp.ge.s32.totalorder %s39_s26, 2 }
  0x12   : > { %p55_p1 = scmp.ne.s32.totalorder %s1969_s20, %s1965_s19  ;;  %p56_p2 = scmp.eq.s32.totalorder %s1981_s23, 0 }
  0x13   : > { %p61_p3 = scmp.ne.s32.totalorder %s1965_s19, %s1961_s18  ;;  %s2964_s26 = smov (%p41_p0, %s39_s26), 0 }
  0x14   : > { %2879 = sst [smem:[#allocation19_spill]] %s2964_s26  ;;  %p2064_p4 = por %p56_p2, %p55_p1 }
  0x15   : > { %p62_p5 = scmp.eq.s32.totalorder %s2052_s24, 0  ;;  %s43_s29 = ssub.s32 %s1977_s22, %s2964_s26 }
  0x16   : > { %p193_p6 = scmp.eq.s32.totalorder %s2052_s24, 1  ;;  %p46_p7 = scmp.eq.s32.totalorder %s43_s29, 0 }
  0x17   : > { %p2072_p8 = por %p62_p5, %p61_p3  ;;  %p199_p10 = scmp.eq.s32.totalorder %s1431_s25, 1 }
  0x18   : > { %p2076_p9 = por %p193_p6, %p55_p1  ;;  %p1433_p12 = scmp.ge.s32.totalorder %s1981_s23, 2 }
  0x19   : > { %s2081_s7 = scalar_select %p46_p7, %s1969_s20, %s48_s27  }
  0x1a   : > { %s2882_s6 = scalar_select %p2076_p9, 1, 0 }
  0x1b   : > { %2884 = sst [smem:[#allocation21_spill]] %s2081_s7  ;;  %p2083_p11 = por %p199_p10, %p61_p3 }
  0x1c   : > { %2883 = sst [smem:[#allocation20_spill]] %s2882_s6  ;;  %p1550_p13 = scmp.lt.s32.totalorder %s1981_s23, 2 }
  0x1d   : > { %s2885_s8 = scalar_select %p2083_p11, 1, 0 }
  0x1e   : > { %s2090_s9 = sand.u32 1, %s1969_s20   ;;  %s243_s10 = sand.u32 1, %s1981_s23  }
  0x1f   : > { %2886 = sst [smem:[#allocation22_spill]] %s2885_s8  ;;  %s2094_s11 = sshll.u32 %s2090_s9, 3 }
  0x20   : > { %p2098_p0 = pnand %p1550_p13, %p2064_p4  ;;  %s2103_s13 = sshll.u32 %s1977_s22, 3 }
  0x21   : > { %s2888_s1 = sld [smem:[#allocation43_spill]]  ;;  %s247_s25 = scalar_lea.vmem [#allocation5], %s2094_s11 }
  0x22   : > { %s258_s27 = sshll.u32 %s247_s25, 4  ;;  %s2110_s28 = scalar_lea.sflag [#allocation6], %s243_s10  ;;  %s259_s27 = int_to_ptr.vmem [resolvable:$true] %s258_s27 }
  0x23   : > { %s2889_s4 = sld [smem:[#allocation45_spill]]  ;;  %s311_s14 = scalar_lea.vmem [#allocation10], %s2094_s11 }
  0x24   : > { %s2120_s15 = sshll.u32 %s311_s14, 4  ;;  %p1449_p1 = scmp.ge.s32.totalorder %s1981_s23, 1 }
  0x25   : > { %2890 = sst [smem:[#allocation23_spill]] %s2120_s15  ;;  %p327_p2 = scmp.lt.s32.totalorder %s1981_s23, 3 }
  0x26   : > { %s2893_s3 = sld [smem:[#allocation44_spill]]  ;;  %s1984_s20 = smov 8  }
  0x27   : > { %s254_s16 = scalar_lea.hbm %s2888_s1, %s2103_s13  ;;  %p2130_p3 = pnand %p1449_p1, %p327_p2 }
  0x28   : > { %s256_s17 = sshll.u32 %s254_s16, 4  ;;  %s1443_s16 = sshll.u32 %s2090_s9, 4  ;;  %s257_s17 = int_to_ptr.hbm [resolvable:$true] %s256_s17 }
  0x29   : > { %1536 = dma.hbm_to_vmem [thread:$0]  (!%p2098_p0), %s257_s17, 128, %s259_s27, %s2110_s28  }
  0x2a   : > { %s316_s7 = scalar_lea.hbm %s2889_s4, %s2103_s13  ;;  %s1510_s17 = sshll.u32 %s1977_s22, 4 }
  0x2b   : > { %s2122_s1 = sshll.u32 %s316_s7, 4  ;;  %s289_s14 = scalar_lea.vmem [#allocation8], %s1443_s16 }
  0x2c   : > { %2891 = sst [smem:[#allocation24_spill]] %s2122_s1  ;;  %s294_s29 = scalar_lea.hbm %s2893_s3, %s1510_s17 }
  0x2d   : > { %s295_s7 = sshll.u32 %s294_s29, 4  ;;  %s297_s15 = sshll.u32 %s289_s14, 4  ;;  %s296_s7 = int_to_ptr.hbm [resolvable:$true] %s295_s7  ;;  %s298_s15 = int_to_ptr.vmem [resolvable:$true] %s297_s15 }
  0x2e   : > { %s2137_s1 = scalar_lea.sflag [#allocation9], %s243_s10  ;;  %s1983_s4 = smov 128  }
  0x2f   : > { %1542 = dma.hbm_to_vmem [thread:$0]  (!%p2098_p0), %s296_s7, 256, %s298_s15, %s2137_s1, %s1983_s4, %s1983_s4, %s1984_s20  }
  0x30   : > { %s1434_s23 = sshll.u32 %s2090_s9, 5  ;;  %s1507_s8 = sshll.u32 %s1977_s22, 5 }
  0x31   : > { %s230_s16 = scalar_lea.hbm %s2831_s0, %s1507_s8  ;;  %s223_s27 = scalar_lea.vmem [#allocation2], %s1434_s23 }
  0x32   : > { %s233_s29 = sshll.u32 %s223_s27, 4  ;;  %s231_s14 = sshll.u32 %s230_s16, 4  ;;  %s234_s29 = int_to_ptr.vmem [resolvable:$true] %s233_s29  ;;  %s232_s14 = int_to_ptr.hbm [resolvable:$true] %s231_s14 }
  0x33   : > { %s2894_s10 = sld [smem:[#allocation23_spill]]  ;;  %s220_s18 = scalar_lea.sflag [#allocation3], %s2090_s9 }
  0x34   : > { %s2895_s3 = sld [smem:[#allocation24_spill]]  ;;  %s1985_s6 = smov 256  }
  0x35   : > { %s1986_s4 = smov 16   ;;  %s274_s8 = scalar_lea.hbm %s2833_s2, %s2103_s13 }
  0x36   : > { %1533 = dma.hbm_to_vmem [thread:$0]  (!%p2098_p0), %s232_s14, 512, %s234_s29, %s220_s18, %s1985_s6, %s1985_s6, %s1986_s4  }
  0x37   : > { %s269_s7 = scalar_lea.vmem [#allocation7], %s2094_s11  ;;  %s276_s23 = sshll.u32 %s274_s8, 4  ;;  %s277_s23 = int_to_ptr.hbm [resolvable:$true] %s276_s23 }
  0x38   : > { %s278_s26 = sshll.u32 %s269_s7, 4  ;;  %s1987_s17 = smov 64   ;;  %s279_s26 = int_to_ptr.vmem [resolvable:$true] %s278_s26 }
  0x39   : > { %1539 = dma.hbm_to_vmem [thread:$0]  (!%p2098_p0), %s277_s23, 128, %s279_s26, %s2110_s28  }
  0x3a   : > { %s1988_s16 = smov 4   ;;  %s2896_s27 = int_to_ptr.vmem [resolvable:$true] %s2894_s10 }
  0x3b   : > { %s2897_s9 = int_to_ptr.hbm [resolvable:$true] %s2895_s3  ;;  %331 = sbr.rel (%p2130_p3) target bundleno = 862 (0x35e), region = 40 }
  0x3c   : > { %1545 = dma.hbm_to_vmem [thread:$0]  (!%p2098_p0), %s2897_s9, 128, %s2896_s27, %s2137_s1, %s1987_s17, %s1987_s17, %s1988_s16  }
  0x40   : > { %s2168_s18 = sand.u32 1, %s1965_s19  }
  0x41   : > { %s1450_s6 = sshll.u32 %s2168_s18, 5  ;;  %s334_s11 = scalar_lea.sflag [#allocation3], %s2168_s18 }
  0x42   : > { %s2174_s13 = scalar_lea.vmem [#allocation2], %s1450_s6 }
  0x43   : > { %1944 = dma.done.wait (%p2072_p8), %s334_s11, 512  }
  0x44   : > { %1946 = vsyncadd (%p2072_p8), %s334_s11, 4294966784  ;;  %s343_s1 = sand.u32 1, %s2052_s24   ;;  %s2182_s3 = sshll.u32 %s2168_s18, 3 }
  0x45   : > { %s344_s12 = scalar_lea.sflag [#allocation6], %s343_s1  ;;  %s347_s28 = scalar_lea.vmem [#allocation5], %s2182_s3 }
  0x46   : > { %1948 = dma.done.wait (%p2072_p8), %s344_s12, 256  }
  0x47   : > { %1950 = vsyncadd (%p2072_p8), %s344_s12, 4294967040  ;;  %s1453_s25 = sshll.u32 %s2168_s18, 4  ;;  %s357_s29 = scalar_lea.vmem [#allocation7], %s2182_s3 }
  0x48   : > { %s364_s14 = scalar_lea.sflag [#allocation9], %s343_s1  ;;  %s2191_s10 = scalar_lea.vmem [#allocation8], %s1453_s25 }
  0x49   : > { %1952 = dma.done.wait (%p2072_p8), %s364_s14, 384  }
  0x4a   : > { %1954 = vsyncadd (%p2072_p8), %s364_s14, 4294966912  ;;  %v435_v0 = vld [vmem:[%s357_s29] sm:$0xff]  ;;  %v436_v1 = vld [vmem:[%s347_s28] sm:$0xff]  ;;  %vm522_vm0 = vcmask 1043456   ;;  %vm473_vm1 = vcmask 64512   ;;  %s377_s24 = scalar_lea.vmem [#allocation10], %s2182_s3 }
  0x4b   : > { %v438_v2 = vunpack.c.l.b16 %v435_v0  ;;  %v439_v3 = vunpack.c.h.b16 %v435_v0  ;;  %v469_v4 = vunpack.c.l.b16 %v436_v1  ;;  %v470_v5 = vunpack.c.h.b16 %v436_v1  ;;  %s2783_s30 = scalar_lea.vmem [#allocation11], %s1450_s6  ;;  %s1515_s4 = sshll.u32 %s1973_s21, 5 }
  0x4c   : > { %vm1154_vm2 = vcmask 130048   ;;  %s1250_s8 = scalar_lea.hbm %s2836_s5, %s1515_s4  ;;  %s1251_s26 = sshll.u32 %s2783_s30, 4  ;;  %s1252_s26 = int_to_ptr.vmem [resolvable:$true] %s1251_s26 }
  0x4d   : > { %v440_v6 = vpack.c.b16 %v438_v2, %v438_v2  ;;  %v441_v7 = vpack.c.b16 %v439_v3, %v439_v3  ;;  %v471_v8 = vpack.c.b16 %v469_v4, %v469_v4  ;;  %v472_v9 = vpack.c.b16 %v470_v5, %v470_v5  ;;  %s1253_s23 = sshll.u32 %s1250_s8, 4  ;;  %s1237_s21 = scalar_lea.sflag [#allocation4], %s2168_s18  ;;  %s1254_s23 = int_to_ptr.hbm [resolvable:$true] %s1253_s23 }
  0x4e   : > { %s1905_s17 = sshra.s32 %s1254_s23, 4  ;;  %s1911_s6 = scalar_lea.hbm %s2836_s5, 64  ;;  %s1906_s17 = int_to_ptr.hbm [resolvable:$true] %s1905_s17 }
  0x4f   : > { %444 = vxpose.binary.xlu0.c.b16.start.end [1/2] (short) %v441_v7, %v440_v6, 128  ;;  %v524_v10 = vsel %vm522_vm0, %v471_v8, 0  ;;  %v527_v11 = vsel %vm522_vm0, %v472_v9, 0  ;;  %s1907_s16 = scalar_lea.hbm %s1906_s17, 32  ;;  %p1912_p7 = scmp.lt.s32.totalorder %s1906_s17, %s2836_s5 }
  0x50   : > { %536 = vmatpush.bf16.msra.mxu0 %v524_v10  ;;  %625 = vmatpush.bf16.msra.mxu1 %v527_v11  ;;  %p1908_p4 = scmp.ne.s32.totalorder %s1906_s17, %s1907_s16  ;;  %p1913_p8 = scmp.lt.s32.totalorder %s1911_s6, %s1907_s16 }
  0x51   : > { %1517 = vmatpush.bf16.msra.mxu3 %v527_v11  ;;  %1516 = vmatpush.bf16.msra.mxu2 %v524_v10 }
  0x52   : > { %p1909_p5 = pnand %p1908_p4, %p2076_p9  ;;  %p1914_p10 = por %p1913_p8, %p1912_p7 }
  0x54   : > { %p1910_p6 = pneg %p1909_p5 }
  0x56   : > { %p1915_p13 = pnand %p1914_p10, %p1910_p6 }
  0xfb   : > { %v452_v12 = vpop.trf.xlu0 }
  0xfc   : > { %1456 = vmatmul.msk.bf16.vlgmr.msra.gmra.mxu0 %vm473_vm1, %v452_v12  ;;  %1472 = vmatmul.msk.bf16.vlgmr.msra.gmra.mxu1 %vm473_vm1, %v452_v12 }
 0x103   : > { %v453_v13 = vpop.trf.xlu0 }
 0x10b   : > { %v454_v14 = vpop.trf.xlu0 }
 0x10c   : > { %1457 = vmatmul.msk.bf16.gmra.mxu0 %vm473_vm1, %v454_v14  ;;  %1473 = vmatmul.msk.bf16.gmra.mxu1 %vm473_vm1, %v454_v14 }
 0x113   : > { %v455_v15 = vpop.trf.xlu0 }
 0x11b   : > { %v456_v16 = vpop.trf.xlu0 }
 0x11c   : > { %1458 = vmatmul.msk.bf16.gmra.mxu0 %vm473_vm1, %v456_v16  ;;  %1474 = vmatmul.msk.bf16.gmra.mxu1 %vm473_vm1, %v456_v16 }
 0x123   : > { %v457_v17 = vpop.trf.xlu0 }
 0x124   : > { %1482 = vmatmul.msk.bf16.vlgmr.msra.gmra.mxu3 %vm473_vm1, %v457_v17 }
 0x12b   : > { %v458_v18 = vpop.trf.xlu0 }
 0x12c   : > { %1459 = vmatmul.msk.bf16.gmra.mxu0 %vm473_vm1, %v458_v18  ;;  %1475 = vmatmul.msk.bf16.gmra.mxu1 %vm473_vm1, %v458_v18 }
 0x133   : > { %v459_v19 = vpop.trf.xlu0 }
 0x134   : > { %1467 = vmatmul.msk.bf16.vlgmr.msra.gmra.mxu2 %vm473_vm1, %v459_v19  ;;  %1483 = vmatmul.msk.bf16.gmra.mxu3 %vm473_vm1, %v459_v19 }
 0x13b   : > { %v460_v20 = vpop.trf.xlu0 }
 0x13c   : > { %1460 = vmatmul.msk.bf16.gmra.mxu0 %vm473_vm1, %v460_v20  ;;  %1476 = vmatmul.msk.bf16.gmra.mxu1 %vm473_vm1, %v460_v20 }
 0x143   : > { %v461_v21 = vpop.trf.xlu0 }
 0x144   : > { %1468 = vmatmul.msk.bf16.gmra.mxu2 %vm473_vm1, %v461_v21  ;;  %1484 = vmatmul.msk.bf16.gmra.mxu3 %vm473_vm1, %v461_v21 }
 0x14b   : > { %v462_v22 = vpop.trf.xlu0 }
 0x14c   : > { %1461 = vmatmul.msk.bf16.gmra.mxu0 %vm473_vm1, %v462_v22  ;;  %1477 = vmatmul.msk.bf16.gmra.mxu1 %vm473_vm1, %v462_v22 }
 0x153   : > { %v463_v23 = vpop.trf.xlu0 }
 0x154   : > { %1469 = vmatmul.msk.bf16.gmra.mxu2 %vm473_vm1, %v463_v23  ;;  %1485 = vmatmul.msk.bf16.gmra.mxu3 %vm473_vm1, %v463_v23 }
 0x15b   : > { %v464_v24 = vpop.trf.xlu0 }
 0x15c   : > { %1462 = vmatmul.msk.bf16.gmra.mxu0 %vm473_vm1, %v464_v24  ;;  %1478 = vmatmul.msk.bf16.gmra.mxu1 %vm473_vm1, %v464_v24 }
 0x163   : > { %v465_v25 = vpop.trf.xlu0 }
 0x164   : > { %1470 = vmatmul.msk.bf16.gmra.mxu2 %vm473_vm1, %v465_v25  ;;  %1486 = vmatmul.msk.bf16.gmra.mxu3 %vm473_vm1, %v465_v25 }
 0x16b   : > { %v466_v26 = vpop.trf.xlu0 }
 0x16c   : > { %1463 = vmatmul.msk.bf16.gmra.mxu0 %vm473_vm1, %v466_v26  ;;  %1479 = vmatmul.msk.bf16.gmra.mxu1 %vm473_vm1, %v466_v26 }
 0x173   : > { %v467_v27 = vpop.trf.xlu0 }
 0x174   : > { %1487 = vmatmul.msk.bf16.gmra.mxu3 %vm473_vm1, %v467_v27  ;;  %1471 = vmatmul.msk.bf16.gmra.mxu2 %vm473_vm1, %v467_v27 }
 0x179   : > { %v2224_v28 = vpop.f32.mrf.mxu0  ;;  %v2226_v29 = vpop.f32.mrf.mxu1 }
 0x17a   : > { %2898 = vst [vmem:[#allocation25_spill] sm:$0xff] %v2224_v28 }
 0x17c   : > { %1464 = vmatmul.msk.bf16.gmra.mxu0 %vm473_vm1, %v453_v13  ;;  %1480 = vmatmul.msk.bf16.gmra.mxu1 %vm473_vm1, %v453_v13 }
 0x181   : > { %v2230_v30 = vpop.f32.mrf.mxu0  ;;  %v2232_v31 = vpop.f32.mrf.mxu1 }
 0x189   : > { %v2234_v32 = vpop.f32.mrf.mxu0  ;;  %v2236_v33 = vpop.f32.mrf.mxu1 }
 0x18a   : > { %2899 = vst [vmem:[#allocation26_spill] sm:$0xff] %v2234_v32  ;;  %v744_v8 = vmax.f32 %v2226_v29, %v2236_v33 }
 0x18c   : > { %1465 = vmatmul.msk.bf16.gmra.mxu0 %vm473_vm1, %v455_v15  ;;  %1481 = vmatmul.msk.bf16.gmra.mxu1 %vm473_vm1, %v455_v15 }
 0x191   : > { %v2240_v34 = vpop.f32.mrf.mxu0  ;;  %v2242_v35 = vpop.f32.mrf.mxu1 }
 0x192   : > { %2900 = vst [vmem:[#allocation27_spill] sm:$0xff] %v2240_v34  ;;  %v745_v15 = vmax.f32 %v2232_v31, %v2242_v35 }
 0x199   : > { %v2244_v36 = vpop.f32.mrf.mxu0  ;;  %v2246_v37 = vpop.f32.mrf.mxu1 }
 0x19a   : > { %v746_v9 = vmax.f32 %v744_v8, %v2246_v37 }
 0x19c   : > { %1466 = vmatmul.msk.bf16.gmra.mxu0 %vm473_vm1, %v457_v17 }
 0x1a1   : > { %v2249_v38 = vpop.f32.mrf.mxu0  ;;  %v2251_v39 = vpop.f32.mrf.mxu1 }
 0x1a2   : > { %v747_v18 = vmax.f32 %v745_v15, %v2251_v39 }
 0x1a7   : > { %v2257_v42 = vpop.f32.mrf.mxu3 }
 0x1a8   : > { %2902 = vst [vmem:[#allocation29_spill] sm:$0xff] %v2257_v42 }
 0x1a9   : > { %v2253_v40 = vpop.f32.mrf.mxu0  ;;  %v2255_v41 = vpop.f32.mrf.mxu1 }
 0x1aa   : > { %2901 = vst [vmem:[#allocation28_spill] sm:$0xff] %v2253_v40  ;;  %v748_v11 = vmax.f32 %v746_v9, %v2255_v41 }
 0x1af   : > { %v2263_v45 = vpop.f32.mrf.mxu3 }
 0x1b1   : > { %v2259_v43 = vpop.f32.mrf.mxu0  ;;  %v2261_v44 = vpop.f32.mrf.mxu1 }
 0x1b2   : > { %v749_v20 = vmax.f32 %v747_v18, %v2261_v44 }
 0x1b7   : > { %v2273_v50 = vpop.f32.mrf.mxu3  ;;  %v2297_v62 = vpop.f32.mrf.mxu2 }
 0x1b8   : > { %2903 = vst [vmem:[#allocation30_spill] sm:$0xff] %v2273_v50 }
 0x1b9   : > { %v2265_v46 = vpop.f32.mrf.mxu0  ;;  %v2267_v47 = vpop.f32.mrf.mxu1 }
 0x1ba   : > { %v750_v13 = vmax.f32 %v748_v11, %v2267_v47 }
 0x1bf   : > { %v2279_v53 = vpop.f32.mrf.mxu3  ;;  %v2309_v4 = vpop.f32.mrf.mxu2 }
 0x1c1   : > { %v2269_v48 = vpop.f32.mrf.mxu0  ;;  %v2271_v49 = vpop.f32.mrf.mxu1 }
 0x1c2   : > { %v751_v23 = vmax.f32 %v749_v20, %v2271_v49 }
 0x1c7   : > { %v2285_v56 = vpop.f32.mrf.mxu3  ;;  %v2320_v10 = vpop.f32.mrf.mxu2 }
 0x1c9   : > { %v2275_v51 = vpop.f32.mrf.mxu0  ;;  %v2277_v52 = vpop.f32.mrf.mxu1 }
 0x1ca   : > { %v752_v16 = vmax.f32 %v750_v13, %v2277_v52 }
 0x1cf   : > { %v2291_v59 = vpop.f32.mrf.mxu3  ;;  %v2336_v21 = vpop.f32.mrf.mxu2 }
 0x1d1   : > { %v2281_v54 = vpop.f32.mrf.mxu0  ;;  %v2283_v55 = vpop.f32.mrf.mxu1 }
 0x1d2   : > { %2904 = vst [vmem:[#allocation31_spill] sm:$0xff] %v2281_v54  ;;  %v753_v27 = vmax.f32 %v751_v23, %v2283_v55 }
 0x1d7   : > { %v2303_v1 = vpop.f32.mrf.mxu3  ;;  %v2353_v18 = vpop.f32.mrf.mxu2 }
 0x1d8   : > { %2905 = vst [vmem:[#allocation32_spill] sm:$0xff] %v2303_v1 }
 0x1d9   : > { %v2287_v57 = vpop.f32.mrf.mxu0  ;;  %v2289_v58 = vpop.f32.mrf.mxu1 }
 0x1da   : > { %v754_v19 = vmax.f32 %v752_v16, %v2289_v58 }
 0x1df   : > { %v2311_v5 = vpop.f32.mrf.mxu3 }
 0x1e0   : > { %2906 = vst [vmem:[#allocation33_spill] sm:$0xff] %v2311_v5 }
 0x1e1   : > { %v2293_v60 = vpop.f32.mrf.mxu0  ;;  %v2295_v61 = vpop.f32.mrf.mxu1 }
 0x1e2   : > { %v755_v9 = vmax.f32 %v753_v27, %v2295_v61 }
 0x1e7   : > { %v2323_v12 = vpop.f32.mrf.mxu3 }
 0x1e8   : > { %2907 = vst [vmem:[#allocation34_spill] sm:$0xff] %v2323_v12 }
 0x1e9   : > { %v2299_v63 = vpop.f32.mrf.mxu0  ;;  %v2301_v0 = vpop.f32.mrf.mxu1 }
 0x1ea   : > { %v756_v22 = vmax.f32 %v754_v19, %v2301_v0 }
 0x1ef   : > { %v2341_v25 = vpop.f32.mrf.mxu3 }
 0x1f1   : > { %v2305_v2 = vpop.f32.mrf.mxu0  ;;  %v2307_v3 = vpop.f32.mrf.mxu1 }
 0x1f2   : > { %v757_v15 = vmax.f32 %v755_v9, %v2307_v3 }
 0x1f9   : > { %v2313_v6 = vpop.f32.mrf.mxu0  ;;  %v2315_v7 = vpop.f32.mrf.mxu1 }
 0x1fa   : > { %v758_v24 = vmax.f32 %v756_v22, %v2315_v7  ;;  %v2358_v22 = vpop.f32.mrf.mxu3 }
 0x201   : > { %v2326_v14 = vpop.f32.mrf.mxu1  ;;  %v2331_v17 = vpop.f32.mrf.mxu0 }
 0x202   : > { %v759_v19 = vmax.f32 %v757_v15, %v2326_v14  ;;  %v707_v15 = vmax.f32 %v2224_v28, %v2234_v32 }
 0x209   : > { %v2343_v26 = vpop.f32.mrf.mxu1  ;;  %v2348_v11 = vpop.f32.mrf.mxu0 }
 0x20a   : > { %2908 = vst [vmem:[#allocation35_spill] sm:$0xff] %v2343_v26  ;;  %v760_v8 = vmax.f32 %v758_v24, %v2343_v26 }
 0x20c   : > { %v762_v13 = vmax.f32 %v760_v8, %v2257_v42 }
 0x20e   : > { %v764_v16 = vmax.f32 %v762_v13, %v2273_v50  ;;  %v2370_v50 = vpop.f32.mrf.mxu2 }
 0x210   : > { %v766_v24 = vmax.f32 %v764_v16, %v2285_v56  ;;  %v708_v16 = vmax.f32 %v2230_v30, %v2240_v34 }
 0x211   : > { %v2356_v20 = vpop.f32.mrf.mxu1  ;;  %v2363_v26 = vpop.f32.mrf.mxu0 }
 0x212   : > { %v761_v23 = vmax.f32 %v759_v19, %v2356_v20  ;;  %v768_v9 = vmax.f32 %v766_v24, %v2303_v1 }
 0x214   : > { %v763_v27 = vmax.f32 %v761_v23, %v2263_v45  ;;  %v770_v42 = vmax.f32 %v768_v9, %v2323_v12  ;;  %v2376_v23 = vpop.f32.mrf.mxu3 }
 0x215   : > { %2909 = vst [vmem:[#allocation36_spill] sm:$0xff] %v2376_v23 }
 0x216   : > { %v765_v8 = vmax.f32 %v763_v27, %v2279_v53  ;;  %v709_v27 = vmax.f32 %v707_v15, %v2244_v36  ;;  %v772_v32 = vmax.f32 %v770_v42, %v2358_v22 }
 0x218   : > { %v767_v13 = vmax.f32 %v765_v8, %v2291_v59  ;;  %v710_v8 = vmax.f32 %v708_v16, %v2249_v38  ;;  %v711_v1 = vmax.f32 %v709_v27, %v2253_v40  ;;  %v2392_v40 = vpop.f32.mrf.mxu2 }
 0x219   : > { %v2386_v12 = vpop.f32.mrf.mxu0 }
 0x21a   : > { %v769_v19 = vmax.f32 %v767_v13, %v2311_v5  ;;  %v712_v9 = vmax.f32 %v710_v8, %v2259_v43  ;;  %v713_v13 = vmax.f32 %v711_v1, %v2265_v46 }
 0x21c   : > { %v771_v24 = vmax.f32 %v769_v19, %v2341_v25  ;;  %v714_v5 = vmax.f32 %v712_v9, %v2269_v48  ;;  %v715_v15 = vmax.f32 %v713_v13, %v2275_v51 }
 0x21e   : > { %v773_v28 = vmax.f32 %v771_v24, %v2376_v23  ;;  %v716_v16 = vmax.f32 %v714_v5, %v2281_v54  ;;  %v717_v27 = vmax.f32 %v715_v15, %v2287_v57 }
 0x220   : > { %v774_v34 = vmax.f32 %v772_v32, %v773_v28  ;;  %v718_v24 = vmax.f32 %v716_v16, %v2293_v60  ;;  %v719_v8 = vmax.f32 %v717_v27, %v2299_v63  ;;  %v2405_v16 = vpop.f32.mrf.mxu2 }
 0x221   : > { %v2400_v54 = vpop.f32.mrf.mxu0 }
 0x222   : > { %v775_v19 = vrot.slane %v774_v34, 4  ;;  %v720_v23 = vmax.f32 %v718_v24, %v2305_v2  ;;  %v721_v28 = vmax.f32 %v719_v8, %v2313_v6 }
 0x224   : > { %v776_v42 = vmax.f32 %v774_v34, %v775_v19  ;;  %v722_v9 = vmax.f32 %v720_v23, %v2331_v17  ;;  %v723_v13 = vmax.f32 %v721_v28, %v2348_v11 }
 0x226   : > { %v777_v1 = vrot.slane %v776_v42, 2  ;;  %v724_v15 = vmax.f32 %v722_v9, %v2363_v26  ;;  %v725_v34 = vmax.f32 %v723_v13, %v2386_v12 }
 0x228   : > { %v778_v32 = vmax.f32 %v776_v42, %v777_v1  ;;  %v726_v19 = vmax.f32 %v724_v15, %v2400_v54  ;;  %v727_v24 = vmax.f32 %v725_v34, %v2297_v62  ;;  %v2421_v13 = vpop.f32.mrf.mxu2 }
 0x22a   : > { %v779_v5 = vrot.slane %v778_v32, 1  ;;  %v728_v42 = vmax.f32 %v726_v19, %v2309_v4  ;;  %v729_v28 = vmax.f32 %v727_v24, %v2320_v10 }
 0x22c   : > { %v2407_v27 = vmax.f32 %v778_v32, %v779_v5  ;;  %v730_v32 = vmax.f32 %v728_v42, %v2336_v21 }
 0x22e   : > { %v782_v23 = vsub.f32 %v2226_v29, %v2407_v27  ;;  %v784_v8 = vsub.f32 %v2232_v31, %v2407_v27  ;;  %v786_v1 = vsub.f32 %v2236_v33, %v2407_v27  ;;  %v788_v9 = vsub.f32 %v2242_v35, %v2407_v27 }
 0x22f   : > { %v790_v29 = vsub.f32 %v2246_v37, %v2407_v27  ;;  %v731_v31 = vmax.f32 %v729_v28, %v2353_v18  ;;  %v792_v33 = vsub.f32 %v2251_v39, %v2407_v27  ;;  %v732_v35 = vmax.f32 %v730_v32, %v2370_v50 }
 0x230   : > { %v847_v5 = vmul.f32 1.442695, %v782_v23  ;;  %v851_v15 = vmul.f32 1.442695, %v784_v8  ;;  %v855_v34 = vmul.f32 1.442695, %v786_v1  ;;  %v794_v24 = vsub.f32 %v2255_v41, %v2407_v27 }
 0x231   : > { %v859_v19 = vmul.f32 1.442695, %v788_v9  ;;  %v863_v42 = vmul.f32 1.442695, %v790_v29  ;;  %v733_v23 = vmax.f32 %v731_v31, %v2392_v40  ;;  %v796_v37 = vsub.f32 %v2261_v44, %v2407_v27 }
 0x232   : > { %1609 = vpow2.f32 %v847_v5  ;;  %v867_v8 = vmul.f32 1.442695, %v792_v33  ;;  %v734_v1 = vmax.f32 %v732_v35, %v2405_v16  ;;  %v798_v9 = vsub.f32 %v2267_v47, %v2407_v27 }
 0x233   : > { %1611 = vpow2.f32 %v851_v15  ;;  %v871_v41 = vmul.f32 1.442695, %v794_v24  ;;  %v735_v32 = vmax.f32 %v733_v23, %v2421_v13  ;;  %v2444_v15 = vpop.f32.mrf.mxu2  ;;  %v800_v29 = vsub.f32 %v2271_v49, %v2407_v27 }
 0x234   : > { %1613 = vpow2.f32 %v855_v34  ;;  %v875_v34 = vmul.f32 1.442695, %v796_v37  ;;  %v736_v31 = vmax.f32 %v734_v1, %v2444_v15  ;;  %v879_v35 = vmul.f32 1.442695, %v798_v9 }
 0x235   : > { %1615 = vpow2.f32 %v859_v19  ;;  %v802_v19 = vsub.f32 %v2277_v52, %v2407_v27  ;;  %v804_v49 = vsub.f32 %v2283_v55, %v2407_v27  ;;  %v883_v37 = vmul.f32 1.442695, %v800_v29 }
 0x236   : > { %1617 = vpow2.f32 %v863_v42  ;;  %v737_v24 = vmax.f32 %v735_v32, %v736_v31  ;;  %v806_v52 = vsub.f32 %v2289_v58, %v2407_v27  ;;  %v808_v55 = vsub.f32 %v2295_v61, %v2407_v27 }
 0x237   : > { %1619 = vpow2.f32 %v867_v8  ;;  %v887_v9 = vmul.f32 1.442695, %v802_v19  ;;  %v891_v29 = vmul.f32 1.442695, %v804_v49  ;;  %v810_v58 = vsub.f32 %v2301_v0, %v2407_v27 }
 0x238   : > { %v2435_v28 = vpop.eup %1609  ;;  %1621 = vpow2.f32 %v871_v41  ;;  %v738_v8 = vrot.slane %v737_v24, 4  ;;  %v895_v19 = vmul.f32 1.442695, %v806_v52  ;;  %v814_v61 = vsub.f32 %v2315_v7, %v2407_v27  ;;  %v2916_v52 = vld [vmem:[#allocation35_spill] sm:$0xff] }
 0x239   : > { %2910 = vst [vmem:[#allocation37_spill] sm:$0xff] %v2435_v28  ;;  %v2437_v39 = vpop.eup %1611  ;;  %1623 = vpow2.f32 %v875_v34  ;;  %v899_v49 = vmul.f32 1.442695, %v808_v55 }
 0x23a   : > { %2911 = vst [vmem:[#allocation38_spill] sm:$0xff] %v2437_v39  ;;  %v1010_v5 = vadd.f32 %v2437_v39, %v2435_v28  ;;  %v2446_v44 = vpop.eup %1613  ;;  %1625 = vpow2.f32 %v879_v35  ;;  %v739_v41 = vmax.f32 %v737_v24, %v738_v8  ;;  %v812_v35 = vsub.f32 %v2307_v3, %v2407_v27 }
 0x23b   : > { %2912 = vst [vmem:[#allocation39_spill] sm:$0xff] %v2446_v44  ;;  %v2452_v33 = vpop.eup %1615  ;;  %1627 = vpow2.f32 %v883_v37  ;;  %v816_v37 = vsub.f32 %v2326_v14, %v2407_v27  ;;  %v818_v3 = vsub.f32 %v2916_v52, %v2407_v27  ;;  %v2917_v14 = vld [vmem:[#allocation29_spill] sm:$0xff]  ;;  %v824_v39 = vsub.f32 %v2263_v45, %v2407_v27 }
 0x23c   : > { %v1011_v47 = vadd.f32 %v2446_v44, %v1010_v5  ;;  %2913 = vst [vmem:[#allocation40_spill] sm:$0xff] %v2452_v33  ;;  %v2457_v23 = vpop.eup %1617  ;;  %v740_v34 = vrot.slane %v739_v41, 2  ;;  %1629 = vpow2.f32 %v887_v9  ;;  %v2927_v44 = vld [vmem:[#allocation27_spill] sm:$0xff] }
 0x23d   : > { %2914 = vst [vmem:[#allocation41_spill] sm:$0xff] %v2457_v23  ;;  %v2462_v5 = vpop.eup %1619  ;;  %1631 = vpow2.f32 %v891_v29  ;;  %v915_v52 = vmul.f32 1.442695, %v816_v37  ;;  %v919_v28 = vmul.f32 1.442695, %v818_v3  ;;  %v830_v37 = vsub.f32 %v2285_v56, %v2407_v27 }
 0x23e   : > { %v1012_v42 = vadd.f32 %v2452_v33, %v1011_v47  ;;  %2915 = vst [vmem:[#allocation42_spill] sm:$0xff] %v2462_v5  ;;  %v2467_v31 = vpop.eup %1621  ;;  %v741_v8 = vmax.f32 %v739_v41, %v740_v34  ;;  %1633 = vpow2.f32 %v895_v19  ;;  %v820_v41 = vsub.f32 %v2356_v20, %v2407_v27  ;;  %v2918_v20 = vld [vmem:[#allocation30_spill] sm:$0xff] }
 0x23f   : > { %v907_v34 = vmul.f32 1.442695, %v812_v35  ;;  %1635 = vpow2.f32 %v899_v49  ;;  %v826_v35 = vsub.f32 %v2918_v20, %v2407_v27  ;;  %v931_v20 = vmul.f32 1.442695, %v824_v39 }
 0x240   : > { %v1013_v1 = vadd.f32 %v2457_v23, %v1012_v42  ;;  %v2472_v42 = vpop.eup %1623  ;;  %v742_v29 = vrot.slane %v741_v8, 1  ;;  %v832_v3 = vsub.f32 %v2291_v59, %v2407_v27 }
 0x242   : > { %v1014_v32 = vadd.f32 %v2462_v5, %v1013_v1  ;;  %v2479_v1 = vpop.eup %1625  ;;  %v2507_v49 = vmax.f32 %v741_v8, %v742_v29 }
 0x243   : > { %v2486_v9 = vpop.eup %1627 }
 0x244   : > { %v1015_v47 = vadd.f32 %v2467_v31, %v1014_v32  ;;  %v903_v32 = vmul.f32 1.442695, %v810_v58  ;;  %v2493_v55 = vpop.eup %1629  ;;  %v783_v29 = vsub.f32 %v2230_v30, %v2507_v49  ;;  %v787_v5 = vsub.f32 %v2927_v44, %v2507_v49 }
 0x245   : > { %v2500_v19 = vpop.eup %1631 }
 0x246   : > { %v1016_v24 = vadd.f32 %v2472_v42, %v1015_v47  ;;  %v822_v47 = vsub.f32 %v2917_v14, %v2407_v27  ;;  %1637 = vpow2.f32 %v903_v32  ;;  %v923_v14 = vmul.f32 1.442695, %v820_v41  ;;  %v2509_v45 = vpop.eup %1633 }
 0x247   : > { %1639 = vpow2.f32 %v907_v34  ;;  %v935_v32 = vmul.f32 1.442695, %v826_v35  ;;  %v2919_v34 = vld [vmem:[#allocation25_spill] sm:$0xff] }
 0x248   : > { %v1017_v0 = vadd.f32 %v2479_v1, %v1016_v24  ;;  %v911_v24 = vmul.f32 1.442695, %v814_v61  ;;  %v781_v56 = vsub.f32 %v2919_v34, %v2507_v49 }
 0x24a   : > { %v1018_v7 = vadd.f32 %v2486_v9, %v1017_v0  ;;  %v828_v0 = vsub.f32 %v2279_v53, %v2407_v27  ;;  %1641 = vpow2.f32 %v911_v24  ;;  %v2514_v53 = vpop.eup %1635 }
 0x24b   : > { %1643 = vpow2.f32 %v915_v52  ;;  %v943_v52 = vmul.f32 1.442695, %v830_v37 }
 0x24c   : > { %v1019_v58 = vadd.f32 %v2493_v55, %v1018_v7  ;;  %v927_v7 = vmul.f32 1.442695, %v822_v47  ;;  %1645 = vpow2.f32 %v919_v28  ;;  %v939_v8 = vmul.f32 1.442695, %v828_v0  ;;  %v2523_v39 = vpop.eup %1637  ;;  %v2920_v47 = vld [vmem:[#allocation32_spill] sm:$0xff]  ;;  %v2921_v28 = vld [vmem:[#allocation33_spill] sm:$0xff] }
 0x24d   : > { %1647 = vpow2.f32 %v923_v14  ;;  %v834_v24 = vsub.f32 %v2920_v47, %v2407_v27  ;;  %v2527_v59 = vpop.eup %1639  ;;  %v2923_v0 = vld [vmem:[#allocation34_spill] sm:$0xff]  ;;  %v947_v14 = vmul.f32 1.442695, %v832_v3  ;;  %v845_v47 = vmul.f32 1.442695, %v781_v56 }
 0x24e   : > { %v1020_v61 = vadd.f32 %v2500_v19, %v1019_v58  ;;  %1649 = vpow2.f32 %v927_v7  ;;  %v836_v58 = vsub.f32 %v2921_v28, %v2407_v27  ;;  %v838_v30 = vsub.f32 %v2923_v0, %v2407_v27 }
 0x24f   : > { %1651 = vpow2.f32 %v931_v20  ;;  %v849_v28 = vmul.f32 1.442695, %v783_v29  ;;  %v840_v3 = vsub.f32 %v2341_v25, %v2407_v27  ;;  %v789_v56 = vsub.f32 %v2244_v36, %v2507_v49 }
 0x250   : > { %v1021_v33 = vadd.f32 %v2509_v45, %v1020_v61  ;;  %v2532_v35 = vpop.eup %1641  ;;  %1653 = vpow2.f32 %v935_v32  ;;  %v2924_v61 = vld [vmem:[#allocation26_spill] sm:$0xff]  ;;  %v955_v32 = vmul.f32 1.442695, %v836_v58  ;;  %v959_v44 = vmul.f32 1.442695, %v838_v30 }
 0x251   : > { %2922 = vst [vmem:[#allocation35_spill] sm:$0xff] %v2532_v35  ;;  %v785_v34 = vsub.f32 %v2924_v61, %v2507_v49  ;;  %v2538_v7 = vpop.eup %1643  ;;  %1655 = vpow2.f32 %v939_v8  ;;  %v791_v25 = vsub.f32 %v2249_v38, %v2507_v49  ;;  %v963_v36 = vmul.f32 1.442695, %v840_v3 }
 0x252   : > { %v1022_v41 = vadd.f32 %v2514_v53, %v1021_v33  ;;  %2925 = vst [vmem:[#allocation29_spill] sm:$0xff] %v2538_v7  ;;  %v2541_v20 = vpop.eup %1645  ;;  %1657 = vpow2.f32 %v943_v52  ;;  %v795_v30 = vsub.f32 %v2259_v43, %v2507_v49  ;;  %v797_v38 = vsub.f32 %v2265_v46, %v2507_v49 }
 0x253   : > { %2926 = vst [vmem:[#allocation30_spill] sm:$0xff] %v2541_v20  ;;  %v2545_v0 = vpop.eup %1647  ;;  %1659 = vpow2.f32 %v845_v47  ;;  %v853_v29 = vmul.f32 1.442695, %v785_v34  ;;  %v857_v47 = vmul.f32 1.442695, %v787_v5  ;;  %v809_v3 = vsub.f32 %v2299_v63, %v2507_v49 }
 0x254   : > { %v1023_v33 = vadd.f32 %v2523_v39, %v1022_v41  ;;  %v951_v41 = vmul.f32 1.442695, %v834_v24  ;;  %2928 = vst [vmem:[#allocation25_spill] sm:$0xff] %v2545_v0  ;;  %v2550_v8 = vpop.eup %1649  ;;  %1661 = vpow2.f32 %v849_v28  ;;  %v861_v28 = vmul.f32 1.442695, %v789_v56 }
 0x255   : > { %2929 = vst [vmem:[#allocation32_spill] sm:$0xff] %v2550_v8  ;;  %v2554_v24 = vpop.eup %1651  ;;  %1663 = vpow2.f32 %v947_v14  ;;  %v811_v43 = vsub.f32 %v2305_v2, %v2507_v49  ;;  %v805_v56 = vsub.f32 %v2287_v57, %v2507_v49  ;;  %v842_v63 = vsub.f32 %v2358_v22, %v2407_v27 }
 0x256   : > { %v1024_v37 = vadd.f32 %v2527_v59, %v1023_v33  ;;  %2930 = vst [vmem:[#allocation33_spill] sm:$0xff] %v2554_v24  ;;  %v2559_v58 = vpop.eup %1653  ;;  %1665 = vpow2.f32 %v951_v41  ;;  %v2932_v33 = vld [vmem:[#allocation28_spill] sm:$0xff]  ;;  %v877_v2 = vmul.f32 1.442695, %v797_v38  ;;  %v801_v22 = vsub.f32 %v2275_v51, %v2507_v49 }
 0x257   : > { %2931 = vst [vmem:[#allocation34_spill] sm:$0xff] %v2559_v58  ;;  %v2563_v23 = vpop.eup %1655  ;;  %1667 = vpow2.f32 %v955_v32  ;;  %v865_v32 = vmul.f32 1.442695, %v791_v25  ;;  %v807_v25 = vsub.f32 %v2293_v60, %v2507_v49  ;;  %v905_v60 = vmul.f32 1.442695, %v811_v43 }
 0x258   : > { %v1025_v61 = vadd.f32 %v2532_v35, %v1024_v37  ;;  %v793_v37 = vsub.f32 %v2932_v33, %v2507_v49  ;;  %2933 = vst [vmem:[#allocation26_spill] sm:$0xff] %v2563_v23  ;;  %v2568_v14 = vpop.eup %1657  ;;  %1669 = vpow2.f32 %v853_v29  ;;  %v873_v29 = vmul.f32 1.442695, %v795_v30 }
 0x259   : > { %v2572_v41 = vpop.eup %1659  ;;  %1671 = vpow2.f32 %v959_v44  ;;  %v799_v30 = vsub.f32 %v2269_v48, %v2507_v49  ;;  %v897_v48 = vmul.f32 1.442695, %v807_v25  ;;  %v967_v51 = vmul.f32 1.442695, %v842_v63 }
 0x25a   : > { %v1026_v52 = vadd.f32 %v2538_v7, %v1025_v61  ;;  %v2577_v61 = vpop.eup %1661  ;;  %1673 = vpow2.f32 %v857_v47  ;;  %v885_v25 = vmul.f32 1.442695, %v801_v22 }
 0x25b   : > { %v2581_v33 = vpop.eup %1663  ;;  %1675 = vpow2.f32 %v963_v36  ;;  %v901_v36 = vmul.f32 1.442695, %v809_v3  ;;  %v973_v57 = vadd.f32 %v2577_v61, %v2572_v41 }
 0x25c   : > { %v1027_v34 = vadd.f32 %v2541_v20, %v1026_v52  ;;  %v869_v52 = vmul.f32 1.442695, %v793_v37  ;;  %v2586_v44 = vpop.eup %1665  ;;  %1677 = vpow2.f32 %v861_v28 }
 0x25d   : > { %v2592_v37 = vpop.eup %1667  ;;  %1679 = vpow2.f32 %v865_v32 }
 0x25e   : > { %v1028_v5 = vadd.f32 %v2545_v0, %v1027_v34  ;;  %v2597_v34 = vpop.eup %1669  ;;  %1681 = vpow2.f32 %v869_v52 }
 0x25f   : > { %v2603_v38 = vpop.eup %1671  ;;  %1683 = vpow2.f32 %v873_v29  ;;  %v974_v3 = vadd.f32 %v2597_v34, %v973_v57  ;;  %v881_v57 = vmul.f32 1.442695, %v799_v30 }
 0x260   : > { %v1029_v46 = vadd.f32 %v2550_v8, %v1028_v5  ;;  %v893_v5 = vmul.f32 1.442695, %v805_v56  ;;  %v2607_v32 = vpop.eup %1673  ;;  %1685 = vpow2.f32 %v877_v2  ;;  %v2935_v56 = vld [vmem:[#allocation36_spill] sm:$0xff] }
 0x261   : > { %v2611_v8 = vpop.eup %1675  ;;  %1687 = vpow2.f32 %v901_v36  ;;  %v975_v52 = vadd.f32 %v2607_v32, %v974_v3  ;;  %v844_v29 = vsub.f32 %v2935_v56, %v2407_v27 }
 0x262   : > { %v1030_v47 = vadd.f32 %v2554_v24, %v1029_v46  ;;  %v2934_v46 = vld [vmem:[#allocation31_spill] sm:$0xff]  ;;  %1689 = vpow2.f32 %v905_v60 }
 0x263   : > { %v803_v24 = vsub.f32 %v2934_v46, %v2507_v49  ;;  %1691 = vpow2.f32 %v893_v5  ;;  %v971_v60 = vmul.f32 1.442695, %v844_v29 }
 0x264   : > { %v1031_v28 = vadd.f32 %v2559_v58, %v1030_v47  ;;  %v2615_v47 = vpop.eup %1677  ;;  %1693 = vpow2.f32 %v897_v48 }
 0x265   : > { %v2619_v58 = vpop.eup %1679  ;;  %v976_v63 = vadd.f32 %v2615_v47, %v975_v52  ;;  %v889_v36 = vmul.f32 1.442695, %v803_v24  ;;  %1695 = vpow2.f32 %v967_v51  ;;  %v813_v51 = vsub.f32 %v2313_v6, %v2507_v49 }
 0x266   : > { %v1032_v43 = vadd.f32 %v2563_v23, %v1031_v28  ;;  %v2623_v46 = vpop.eup %1681  ;;  %1697 = vpow2.f32 %v881_v57  ;;  %v841_v57 = vsub.f32 %v2421_v13, %v2507_v49  ;;  %v843_v6 = vsub.f32 %v2444_v15, %v2507_v49 }
 0x267   : > { %v2625_v28 = vpop.eup %1683  ;;  %v977_v27 = vadd.f32 %v2619_v58, %v976_v63  ;;  %1699 = vpow2.f32 %v885_v25  ;;  %v909_v52 = vmul.f32 1.442695, %v813_v51 }
 0x268   : > { %v1033_v2 = vadd.f32 %v2568_v14, %v1032_v43  ;;  %v2629_v30 = vpop.eup %1685  ;;  %1701 = vpow2.f32 %v889_v36  ;;  %v965_v35 = vmul.f32 1.442695, %v841_v57  ;;  %v835_v57 = vsub.f32 %v2370_v50, %v2507_v49 }
 0x269   : > { %v2633_v5 = vpop.eup %1687  ;;  %v978_v24 = vadd.f32 %v2623_v46, %v977_v27  ;;  %1703 = vpow2.f32 %v971_v60  ;;  %v837_v27 = vsub.f32 %v2392_v40, %v2507_v49  ;;  %v839_v60 = vsub.f32 %v2405_v16, %v2507_v49 }
 0x26a   : > { %v1034_v3 = vadd.f32 %v2581_v33, %v1033_v2  ;;  %v2637_v48 = vpop.eup %1689  ;;  %v817_v40 = vsub.f32 %v2348_v11, %v2507_v49  ;;  %v833_v16 = vsub.f32 %v2353_v18, %v2507_v49  ;;  %1705 = vpow2.f32 %v909_v52 }
 0x26b   : > { %v1692_v56 = vpop.eup %1691  ;;  %v979_v2 = vadd.f32 %v2625_v28, %v978_v24  ;;  %v1063_v25 = vpack.c.bf16 %v2637_v48, %v2633_v5  ;;  %v815_v24 = vsub.f32 %v2331_v17, %v2507_v49  ;;  %v957_v51 = vmul.f32 1.442695, %v837_v27 }
 0x26c   : > { %v1035_v43 = vadd.f32 %v2586_v44, %v1034_v3  ;;  %v1694_v63 = vpop.eup %1693  ;;  %v961_v11 = vmul.f32 1.442695, %v839_v60  ;;  %1707 = vpow2.f32 %v965_v35  ;;  %v821_v18 = vsub.f32 %v2386_v12, %v2507_v49 }
 0x26d   : > { %v2651_v36 = vpop.eup %1695  ;;  %1091 = vmatpush.bf16.msrb.mxu2 %v1063_v25  ;;  %v969_v25 = vmul.f32 1.442695, %v843_v6  ;;  %v917_v27 = vmul.f32 1.442695, %v817_v40  ;;  %v831_v52 = vsub.f32 %v2336_v21, %v2507_v49 }
 0x26e   : > { %v1036_v29 = vadd.f32 %v2592_v37, %v1035_v43  ;;  %v980_v43 = vadd.f32 %v2629_v30, %v979_v2  ;;  %v1698_v13 = vpop.eup %1697  ;;  %v819_v2 = vsub.f32 %v2363_v26, %v2507_v49 }
 0x26f   : > { %v1700_v22 = vpop.eup %1699  ;;  %1709 = vpow2.f32 %v969_v25 }
 0x270   : > { %v1037_v3 = vadd.f32 %v2603_v38, %v1036_v29  ;;  %v981_v7 = vadd.f32 %v1698_v13, %v980_v43  ;;  %v1061_v29 = vpack.c.bf16 %v1694_v63, %v1692_v56  ;;  %v1702_v20 = vpop.eup %1701  ;;  %v913_v43 = vmul.f32 1.442695, %v815_v24 }
 0x271   : > { %v1059_v6 = vpack.c.bf16 %v1702_v20, %v1700_v22  ;;  %1711 = vpow2.f32 %v957_v51  ;;  %v953_v24 = vmul.f32 1.442695, %v835_v57  ;;  %v921_v35 = vmul.f32 1.442695, %v819_v2 }
 0x272   : > { %v1038_v15 = vadd.f32 %v2611_v8, %v1037_v3  ;;  %v982_v0 = vadd.f32 %v1700_v22, %v981_v7  ;;  %1092 = vmatpush.bf16.msrb.mxu2 %v1061_v29  ;;  %v2669_v3 = vpop.eup %1703  ;;  %v829_v7 = vsub.f32 %v2320_v10, %v2507_v49  ;;  %1713 = vpow2.f32 %v961_v11 }
 0x273   : > { %1715 = vpow2.f32 %v913_v43  ;;  %v2683_v12 = vpop.eup %1705  ;;  %v823_v22 = vsub.f32 %v2400_v54, %v2507_v49  ;;  %v925_v10 = vmul.f32 1.442695, %v821_v18  ;;  %v1055_v2 = vpack.c.bf16 %v2625_v28, %v2623_v46 }
 0x274   : > { %v1039_v17 = vadd.f32 %v2651_v36, %v1038_v15  ;;  %v983_v26 = vadd.f32 %v1702_v20, %v982_v0  ;;  %v949_v15 = vmul.f32 1.442695, %v833_v16  ;;  %v1057_v0 = vpack.c.bf16 %v1698_v13, %v2629_v30  ;;  %v2687_v60 = vpop.eup %1707 }
 0x275   : > { %1717 = vpow2.f32 %v917_v27  ;;  %v941_v21 = vmul.f32 1.442695, %v829_v7  ;;  %v827_v30 = vsub.f32 %v2309_v4, %v2507_v49  ;;  %v945_v13 = vmul.f32 1.442695, %v831_v52 }
 0x276   : > { %v2674_v23 = vadd.f32 %v2669_v3, %v1039_v17  ;;  %v984_v50 = vadd.f32 %v1692_v56, %v983_v26  ;;  %1093 = vmatpush.bf16.msrb.mxu2 %v1059_v6  ;;  %v825_v56 = vsub.f32 %v2297_v62, %v2507_v49  ;;  %1719 = vpow2.f32 %v949_v15 }
 0x277   : > { %1721 = vpow2.f32 %v953_v24  ;;  %v929_v25 = vmul.f32 1.442695, %v823_v22  ;;  %v1053_v28 = vpack.c.bf16 %v2619_v58, %v2615_v47  ;;  %v1051_v15 = vpack.c.bf16 %v2607_v32, %v2597_v34  ;;  %v1490_v58 = vld [vmem:[%s2191_s10] sm:$0xf]  ;;  %v1513_v47 = vld [vmem:[%s2191_s10 + $0x4] sm:$0xf0] }
 0x278   : > { %v985_v20 = vadd.f32 %v1694_v63, %v984_v50  ;;  %v2692_v63 = vpop.eup %1709  ;;  %1723 = vpow2.f32 %v921_v35  ;;  %v933_v4 = vmul.f32 1.442695, %v825_v56  ;;  %v1049_v22 = vpack.c.bf16 %v2577_v61, %v2572_v41 }
 0x279   : > { %v2696_v54 = vpop.eup %1711  ;;  %v1079_v62 = vpack.c.bf16 %v2692_v63, %v2687_v60  ;;  %1725 = vpow2.f32 %v925_v10  ;;  %v1064_v56 = vpack.c.bf16 %v2527_v59, %v2523_v39  ;;  %v1060_v39 = vpack.c.bf16 %v2500_v19, %v2493_v55 }
 0x27a   : > { %v986_v29 = vadd.f32 %v2633_v5, %v985_v20  ;;  %1094 = vmatpush.bf16.msrb.mxu2 %v1057_v0  ;;  %v2703_v5 = vpop.eup %1713  ;;  %1727 = vpow2.f32 %v941_v21  ;;  %v1491_v21 = vor.u32 %v1513_v47, %v1490_v58  ;;  %v1080_v55 = vpack.c.bf16 %v2669_v3, %v2651_v36 }
 0x27b   : > { %v2705_v17 = vpop.eup %1715  ;;  %1105 = vmatpush.bf16.msrb.mxu3 %v1079_v62  ;;  %1729 = vpow2.f32 %v945_v13  ;;  %v1077_v46 = vpack.c.bf16 %v2703_v5, %v2696_v54  ;;  %v1076_v36 = vpack.c.bf16 %v2592_v37, %v2586_v44  ;;  %v2941_v44 = vld [vmem:[#allocation38_spill] sm:$0xff] }
 0x27c   : > { %v987_v40 = vadd.f32 %v2637_v48, %v986_v29  ;;  %v1718_v16 = vpop.eup %1717  ;;  %v937_v48 = vmul.f32 1.442695, %v827_v30  ;;  %1731 = vpow2.f32 %v929_v25  ;;  %v1062_v30 = vpack.c.bf16 %v2514_v53, %v2509_v45  ;;  %v1512_v45 = vld [vmem:[%s2191_s10 + $0x4] sm:$0xf]  ;;  %v1492_v53 = vld [vmem:[%s2191_s10 + $0x8] sm:$0xf0] }
 0x27d   : > { %v1720_v51 = vpop.eup %1719  ;;  %1733 = vpow2.f32 %v933_v4  ;;  %v1495_v19 = vor.u32 %v1512_v45, %v1492_v53 }
 0x27e   : > { %v988_v49 = vadd.f32 %v2683_v12, %v987_v40  ;;  %1095 = vmatpush.bf16.msrb.mxu2 %v1055_v2  ;;  %v1722_v43 = vpop.eup %1721  ;;  %1735 = vpow2.f32 %v937_v48  ;;  %v1058_v2 = vpack.c.bf16 %v2486_v9, %v2479_v1  ;;  %v1056_v1 = vpack.c.bf16 %v2472_v42, %v2467_v31  ;;  %v2938_v31 = vld [vmem:[#allocation39_spill] sm:$0xff]  ;;  %v2939_v42 = vld [vmem:[#allocation40_spill] sm:$0xff]  ;;  %v2940_v48 = vld [vmem:[#allocation37_spill] sm:$0xff] }
 0x27f   : > { %v1724_v11 = vpop.eup %1723  ;;  %1106 = vmatpush.bf16.msrb.mxu3 %v1077_v46  ;;  %v1075_v7 = vpack.c.bf16 %v1722_v43, %v1720_v51  ;;  %v1052_v3 = vpack.c.bf16 %v2939_v42, %v2938_v31  ;;  %v1050_v37 = vpack.c.bf16 %v2941_v44, %v2940_v48 }
 0x280   : > { %v989_v57 = vadd.f32 %v2705_v17, %v988_v49  ;;  %v1726_v6 = vpop.eup %1725  ;;  %v1067_v62 = vpack.c.bf16 %v1724_v11, %v1718_v16  ;;  %v1065_v49 = vpack.c.bf16 %v2705_v17, %v2683_v12  ;;  %v1078_v12 = vpack.c.bf16 %v2611_v8, %v2603_v38  ;;  %v2937_v17 = vld [vmem:[#allocation42_spill] sm:$0xff] }
 0x281   : > { %v1728_v18 = vpop.eup %1727  ;;  %v1074_v38 = vpack.c.bf16 %v2581_v33, %v2568_v14  ;;  %v2946_v14 = vld [vmem:[#allocation25_spill] sm:$0xff]  ;;  %v2947_v33 = vld [vmem:[#allocation30_spill] sm:$0xff] }
 0x282   : > { %v990_v26 = vadd.f32 %v1718_v16, %v989_v57  ;;  %1096 = vmatpush.bf16.msrb.mxu2 %v1053_v28  ;;  %v1730_v50 = vpop.eup %1729  ;;  %v2943_v57 = vld [vmem:[#allocation26_spill] sm:$0xff]  ;;  %v2944_v28 = vld [vmem:[#allocation32_spill] sm:$0xff] }
 0x283   : > { %1107 = vmatpush.bf16.msrb.mxu3 %v1075_v7  ;;  %v1732_v24 = vpop.eup %1731  ;;  %v1073_v0 = vpack.c.bf16 %v1730_v50, %v1728_v18  ;;  %v1514_v7 = vld [vmem:[%s377_s24] sm:$0xff] }
 0x284   : > { %v991_v27 = vadd.f32 %v1724_v11, %v990_v26  ;;  %v1734_v35 = vpop.eup %1733  ;;  %v1069_v61 = vpack.c.bf16 %v1732_v24, %v1726_v6  ;;  %v2764_v26 = vld [vmem:[%s2174_s13 + $0x8] sm:$0xff] }
 0x285   : > { %v1736_v10 = vpop.eup %1735 }
 0x286   : > { %v992_v52 = vadd.f32 %v1726_v6, %v991_v27  ;;  %1097 = vmatpush.bf16.msrb.mxu2 %v1051_v15  ;;  %v1071_v32 = vpack.c.bf16 %v1736_v10, %v1734_v35  ;;  %v2767_v6 = vld [vmem:[%s2174_s13 + $0x18] sm:$0xff]  ;;  %v2949_v15 = vld [vmem:[#allocation29_spill] sm:$0xff] }
 0x287   : > { %1108 = vmatpush.bf16.msrb.mxu3 %v1073_v0  ;;  %v434_v27 = vpack.c.bf16 %v2767_v6, %v2764_v26 }
 0x288   : > { %v993_v20 = vadd.f32 %v1732_v24, %v992_v52 }
 0x28a   : > { %v994_v29 = vadd.f32 %v1734_v35, %v993_v20  ;;  %1098 = vmatpush.bf16.msrb.mxu2 %v1049_v22  ;;  %v1041_v20 = vrot.slane %v2674_v23, 4 }
 0x28b   : > { %1109 = vmatpush.bf16.msrb.mxu3 %v1071_v32 }
 0x28c   : > { %v995_v34 = vadd.f32 %v1736_v10, %v994_v29  ;;  %v1042_v22 = vadd.f32 %v1041_v20, %v2674_v23 }
 0x28d   : > { %1099 = vmatmul.bf16.vlgmr.msrb.gmra.mxu2 %v1491_v21 }
 0x28e   : > { %1119 = vmatpush.bf16.msra.mxu2 %v1064_v56  ;;  %v996_v13 = vadd.f32 %v1728_v18, %v995_v34  ;;  %v2948_v18 = vpack.c.bf16 %v2946_v14, %v2947_v33 }
 0x28f   : > { %1110 = vmatpush.bf16.msrb.mxu3 %v1069_v61 }
 0x290   : > { %v997_v41 = vadd.f32 %v1730_v50, %v996_v13  ;;  %v2950_v50 = vld [vmem:[#allocation35_spill] sm:$0xff] }
 0x291   : > { %v2951_v52 = vpack.c.bf16 %v2949_v15, %v2950_v50  ;;  %v1227_v50 = vmul.f32 2.0, %v2767_v6 }
 0x292   : > { %1120 = vmatpush.bf16.msra.mxu2 %v1062_v30  ;;  %v998_v59 = vadd.f32 %v1720_v51, %v997_v41  ;;  %v2942_v51 = vld [vmem:[#allocation34_spill] sm:$0xff] }
 0x293   : > { %1111 = vmatpush.bf16.msrb.mxu3 %v1067_v62  ;;  %v1072_v46 = vpack.c.bf16 %v2943_v57, %v2942_v51 }
 0x294   : > { %v999_v40 = vadd.f32 %v1722_v43, %v998_v59  ;;  %v2945_v43 = vld [vmem:[#allocation33_spill] sm:$0xff] }
 0x295   : > { %v1070_v11 = vpack.c.bf16 %v2945_v43, %v2944_v28 }
 0x296   : > { %1121 = vmatpush.bf16.msra.mxu2 %v1060_v39  ;;  %v1000_v25 = vadd.f32 %v2696_v54, %v999_v40 }
 0x297   : > { %1112 = vmatpush.bf16.msrb.mxu3 %v1065_v49 }
 0x298   : > { %v1001_v4 = vadd.f32 %v2703_v5, %v1000_v25  ;;  %v2936_v5 = vld [vmem:[#allocation41_spill] sm:$0xff] }
 0x299   : > { %v1054_v16 = vpack.c.bf16 %v2937_v17, %v2936_v5 }
 0x29a   : > { %1122 = vmatpush.bf16.msra.mxu2 %v1058_v2  ;;  %v1002_v9 = vadd.f32 %v2687_v60, %v1001_v4  ;;  %1113 = vmatmul.bf16.vlgmr.msrb.gmra.mxu3 %v1495_v19  ;;  %v2748_v60 = vld [vmem:[%s2174_s13] sm:$0xff] }
 0x29b   : > { %1133 = vmatpush.bf16.msra.mxu3 %v1080_v55 }
 0x29c   : > { %v1003_v54 = vadd.f32 %v2692_v63, %v1002_v9  ;;  %v2751_v63 = vld [vmem:[%s2174_s13 + $0x10] sm:$0xff] }
 0x29d   : > { %v433_v8 = vpack.c.bf16 %v2751_v63, %v2748_v60 }
 0x29e   : > { %1123 = vmatpush.bf16.msra.mxu2 %v1056_v1  ;;  %v1004_v58 = vrot.slane %v1003_v54, 4 }
 0x29f   : > { %1134 = vmatpush.bf16.msra.mxu3 %v1078_v12 }
 0x2a0   : > { %v1005_v47 = vadd.f32 %v1004_v58, %v1003_v54  ;;  %v1224_v54 = vmul.f32 2.0, %v2748_v60 }
 0x2a2   : > { %1124 = vmatpush.bf16.msra.mxu2 %v1054_v16  ;;  %v1006_v24 = vrot.slane %v1005_v47, 2 }
 0x2a3   : > { %1135 = vmatpush.bf16.msra.mxu3 %v1076_v36 }
 0x2a4   : > { %v1007_v35 = vadd.f32 %v1006_v24, %v1005_v47 }
 0x2a6   : > { %1125 = vmatpush.bf16.msra.mxu2 %v1052_v3  ;;  %v1008_v0 = vrot.slane %v1007_v35, 1 }
 0x2a7   : > { %1136 = vmatpush.bf16.msra.mxu3 %v1074_v38  ;;  %v1226_v38 = vmul.f32 2.0, %v2751_v63  ;;  %v1225_v63 = vmul.f32 2.0, %v2764_v26 }
 0x2a8   : > { %v1009_v10 = vadd.f32 %v1008_v0, %v1007_v35 }
 0x2aa   : > { %1126 = vmatpush.bf16.msra.mxu2 %v1050_v37  ;;  %1737 = vrcp.f32 %v1009_v10  ;;  %v1197_v45 = vand.u32 2147483648, %v1009_v10  ;;  %vm1191_vm4 = vweird.f32 %v1009_v10  ;;  %v1195_v53 = vand.u32 2147483647, %v1009_v10 }
 0x2ab   : > { %1137 = vmatpush.bf16.msra.mxu3 %v1072_v46 }
 0x2ac   : > { %vm1196_vm6 = vcmp.eq.f32.partialorder %v1195_v53, 8.507059e+37 }
 0x2ad   : > { %1127 = vmatmul.bf16.vlgmr.msra.gmra.mxu2 %v1491_v21  ;;  %v1043_v21 = vrot.slane %v1042_v22, 2 }
 0x2ae   : > { %1165 = vmatpush.bf16.msrb.mxu2 %v433_v8 }
 0x2af   : > { %1138 = vmatpush.bf16.msra.mxu3 %v1070_v11  ;;  %v1044_v29 = vadd.f32 %v1043_v21, %v1042_v22 }
 0x2b0   : > { %v1738_v34 = vpop.eup %1737 }
 0x2b1   : > { %v1045_v30 = vrot.slane %v1044_v29, 1  ;;  %v1187_v13 = vmul.f32 %v1738_v34, %v1009_v10  ;;  %vm1192_vm3 = vweird.f32 %v1738_v34 }
 0x2b2   : > { %vm1193_vm5 = vmor %vm1191_vm4, %vm1192_vm3 }
 0x2b3   : > { %1139 = vmatpush.bf16.msra.mxu3 %v2948_v18  ;;  %v1046_v41 = vadd.f32 %v1045_v30, %v1044_v29  ;;  %v1188_v39 = vsub.f32 1.0, %v1187_v13 }
 0x2b5   : > { %1739 = vrcp.f32 %v1046_v41  ;;  %v1189_v40 = vmul.f32 %v1738_v34, %v1188_v39  ;;  %v1212_v60 = vand.u32 2147483648, %v1046_v41  ;;  %vm1206_vm8 = vweird.f32 %v1046_v41 }
 0x2b6   : > { %v1210_v37 = vand.u32 2147483647, %v1046_v41 }
 0x2b7   : > { %1140 = vmatpush.bf16.msra.mxu3 %v2951_v52  ;;  %v1190_v62 = vadd.f32 %v1738_v34, %v1189_v40  ;;  %v1213_v43 = vor.u32 1.1754944e-38, %v1212_v60 }
 0x2b8   : > { %vm1211_vm10 = vcmp.eq.f32.partialorder %v1210_v37, 8.507059e+37 }
 0x2b9   : > { %v1194_v49 = vsel %vm1193_vm5, %v1738_v34, %v1190_v62 }
 0x2ba   : > { %1141 = vmatmul.bf16.vlgmr.msra.gmra.mxu3 %v1495_v19  ;;  %v1198_v19 = vor.u32 1.1754944e-38, %v1197_v45 }
 0x2bb   : > { %1179 = vmatpush.bf16.msrb.mxu3 %v434_v27  ;;  %v1740_v2 = vpop.eup %1739 }
 0x2bc   : > { %v1202_v55 = vmul.f32 %v1740_v2, %v1046_v41  ;;  %v1199_v1 = vsel %vm1196_vm6, %v1198_v19, %v1194_v49  ;;  %vm1207_vm7 = vweird.f32 %v1740_v2 }
 0x2bd   : > { %1500 = vmatmul.msk.bf16.vlgmr.msrb.gmra.mxu2 %vm1154_vm2, %v1514_v7  ;;  %vm1208_vm9 = vmor %vm1206_vm8, %vm1207_vm7 }
 0x2be   : > { %v1203_v12 = vsub.f32 1.0, %v1202_v55 }
 0x2c0   : > { %v1204_v42 = vmul.f32 %v1740_v2, %v1203_v12 }
 0x2c2   : > { %v1205_v3 = vadd.f32 %v1740_v2, %v1204_v42 }
 0x2c4   : > { %v1209_v46 = vsel %vm1208_vm9, %v1740_v2, %v1205_v3 }
 0x2c5   : > { %v1214_v11 = vsel %vm1211_vm10, %v1213_v43, %v1209_v46 }
 0x2ca   : > { %1501 = vmatmul.msk.bf16.vlgmr.msrb.gmra.mxu3 %vm1154_vm2, %v1514_v7 }
 0x310   : > { %v1100_v56 = vpop.f32.mrf.mxu2 }
 0x318   : > { %v1102_v32 = vpop.f32.mrf.mxu2 }
 0x31d   : > { %v1114_v61 = vpop.f32.mrf.mxu3 }
 0x31e   : > { %v1115_v4 = vadd.f32 %v1114_v61, %v1100_v56 }
 0x320   : > { %v1216_v9 = vmul.f32 %v1199_v1, %v1115_v4 }
 0x325   : > { %v1116_v25 = vpop.f32.mrf.mxu3 }
 0x326   : > { %v1117_v36 = vadd.f32 %v1116_v25, %v1102_v32 }
 0x328   : > { %v1218_v8 = vmul.f32 %v1199_v1, %v1117_v36 }
 0x330   : > { %v1128_v59 = vpop.f32.mrf.mxu2 }
 0x338   : > { %v1130_v23 = vpop.f32.mrf.mxu2 }
 0x33d   : > { %v1142_v5 = vpop.f32.mrf.mxu3 }
 0x33e   : > { %v1143_v57 = vadd.f32 %v1142_v5, %v1128_v59 }
 0x340   : > { %v1167_v17 = vpop.f32.mrf.mxu2  ;;  %v1217_v14 = vmul.f32 %v1214_v11, %v1143_v57 }
 0x341   : > { %v1220_v16 = vadd.f32 %v1216_v9, %v1167_v17 }
 0x343   : > { %v1228_v31 = vadd.f32 %v1224_v54, %v1220_v16 }
 0x345   : > { %1232 = vst [vmem:[%s2783_s30] sm:$0xff] %v1228_v31  ;;  %v1144_v48 = vpop.f32.mrf.mxu3 }
 0x346   : > { %v1145_v27 = vadd.f32 %v1144_v48, %v1130_v23 }
 0x348   : > { %v1169_v44 = vpop.f32.mrf.mxu2  ;;  %v1219_v15 = vmul.f32 %v1214_v11, %v1145_v27 }
 0x349   : > { %v1222_v51 = vadd.f32 %v1218_v8, %v1169_v44 }
 0x34b   : > { %v1230_v28 = vadd.f32 %v1226_v38, %v1222_v51 }
 0x34d   : > { %1234 = vst [vmem:[%s2783_s30 + $0x10] sm:$0xff] %v1230_v28  ;;  %v1181_v33 = vpop.f32.mrf.mxu3 }
 0x34e   : > { %v1221_v18 = vadd.f32 %v1217_v14, %v1181_v33 }
 0x350   : > { %v1229_v7 = vadd.f32 %v1225_v63, %v1221_v18 }
 0x352   : > { %1233 = vst [vmem:[%s2783_s30 + $0x8] sm:$0xff] %v1229_v7 }
 0x355   : > { %v1183_v52 = vpop.f32.mrf.mxu3 }
 0x356   : > { %v1223_v26 = vadd.f32 %v1219_v15, %v1183_v52 }
 0x358   : > { %v1231_v58 = vadd.f32 %v1227_v50, %v1223_v26 }
 0x35a   : > { %1235 = vst [vmem:[%s2783_s30 + $0x18] sm:$0xff] %v1231_v58 }
 0x35b   : > { %1918 = shalt.err (!%p1915_p13)
}
 0x35c   : > { %s1989_s18 = smov 256   ;;  %s1990_s1 = smov 16  }
 0x35d   : > { %1528 = dma.vmem_to_hbm [thread:$0]  (%p2076_p9), %s1252_s26, 512, %s1254_s23, %s1237_s21, %s1989_s18, %s1989_s18, %s1990_s1  }
 0x35e PF: > { %s2953_s3 = sld [smem:[#allocation16_spill]]  ;;  %p1547_p0 = pnand %p1433_p12, %p2083_p11 }
 0x35f   : > { %s2955_s28 = sld [smem:[#allocation18_spill]] }
 0x360   : > { %p1548_p1 = pneg %p1547_p0 }
 0x364   : > { %s1268_s25 = sand.u32 1, %s2953_s3  }
 0x365   : > { %s1269_s29 = scalar_lea.sflag [#allocation4], %s1268_s25 }
 0x366   : > { %1956 = dma.done.wait (%p1548_p1), %s1269_s29, 512  }
 0x367   : > { %1958 = vsyncadd (%p1548_p1), %s1269_s29, 4294966784  ;;  %s27_s23 = sadd.s32 1, %s2955_s28   ;;  %s2956_s14 = sld [smem:[#allocation17_spill]] }
 0x368   : > { %p24_p2 = scmp.ge.s32.totalorder %s27_s23, 4   ;;  %s2957_s20 = sld [smem:[#allocation21_spill]] }
 0x369   : > { %s2958_s10 = sld [smem:[#allocation19_spill]]  ;;  %s2959_s18 = smov %s1965_s19 }
 0x36a   : > { %s2961_s21 = smov %s1977_s22 }
 0x36b   :  { %26 = sbr.rel (!%p24_p2) target bundleno = 14 (0xe), region = 133 }
 0x36d   : > { %s2960_s19 = smov %s2956_s14 }
 0x36f   : > { %s2962_s22 = smov %s2958_s10 }
 0x370   :  { %1275 = vsyncpa [#allocation3], 1 }
 0x371   :  { %1277 = vsyncpa [#allocation3 + $0x1], 1 }
 0x372   :  { %1278 = vsyncpa [#allocation6], 1 }
 0x373   :  { %1280 = vsyncpa [#allocation6 + $0x1], 1 }
 0x374   :  { %1281 = vsyncpa [#allocation9], 1 }
 0x375   :  { %1283 = vsyncpa [#allocation9 + $0x1], 1 }
 0x376   :  { %1284 = vsyncpa [#allocation4], 1 }
 0x377   :  { %1286 = vsyncpa [#allocation4 + $0x1], 1 }

</bundles_post_ra>
